<compile_context>
chip_gen: v6e
topology: v6e:2x2x1
jax: 0.10.0
libtpu: 0.0.40
codegen_flags: <defaults>
</compile_context>

<pallas_src>
import math

import numpy as np
import jax
import jax.numpy as jnp
from jax.experimental import pallas as pl
from jax.experimental.pallas import tpu as pltpu


# ---------------------------------------------------------------------------
# Parameter init (exact replica of FadeToBlackMatrixNoPad.__init__/fadetoblack)
# ---------------------------------------------------------------------------
def fadetoblack_mask(im_size, kernel_size):
    ph, pw = kernel_size[0], kernel_size[1]
    H, W = im_size
    P = np.ones((1, H, W), dtype=np.float32)

    # row fade (top/bottom)
    r_top = P[..., ph, :].reshape(1, -1)
    r_bottom = P[..., -ph + 1, :].reshape(1, -1)
    cs = np.linspace(0.0, 1.0, num=ph, endpoint=False).reshape(-1, 1)
    P[..., :ph, :] = r_top * cs
    P[..., -ph:, :] = r_bottom * cs[..., ::-1, :]

    # column fade (left/right) — reads the already-row-faded P, same as the Torch module
    c_left = P[..., pw].reshape(-1, 1)
    c_right = P[..., -pw + 1].reshape(-1, 1)
    cs = np.linspace(0.0, 1.0, num=pw, endpoint=False).reshape(1, -1)
    P[..., :pw] = c_left * cs
    P[..., -pw:] = c_right * cs[..., ::-1]
    return jnp.asarray(P)  # (1, H, W), float32


# ---------------------------------------------------------------------------
# Kernel
# ---------------------------------------------------------------------------
def _fade_kernel(x_ref, p_ref, o_ref):
    # x_ref: (TM, TN) block, p_ref: (1, TN) mask block (row index constant -> VMEM-resident).
    # Single fused multiply-store; (1, TN) broadcasts over (TM, TN).
    o_ref[...] = x_ref[...] * p_ref[...]


# ---------------------------------------------------------------------------
# Block sizing (generation-safe byte budget, no hard row cap)
# ---------------------------------------------------------------------------
_BLOCK_BUDGET_BYTES = 3 << 20   # per block; ~4x (double-buffered in + out) ≈ 12-13 MiB pipelined
_MAX_LANE_BLOCK = 16384         # lane block cap (multiple of 128) for very wide images


def _sublane_multiple(itemsize):
    # rows per packed vreg tile: f32 -> 8, bf16/f16 -> 16, int8/fp8 -> 32
    return {4: 8, 2: 16, 1: 32}.get(itemsize, 8)


def _round_down(v, m):
    return max(m, (v // m) * m)


def _choose_blocks(rows, lanes, itemsize):
    sub = _sublane_multiple(itemsize)

    # Lane (last-dim) block: full extent when modest; otherwise a 128-multiple cap.
    if lanes <= _MAX_LANE_BLOCK:
        tn = lanes                      # full array dim is always a legal block dim
    else:
        tn = _round_down(min(lanes, _MAX_LANE_BLOCK), 128)

    # Row block from the VMEM byte budget, rounded to the dtype's sublane packing.
    if rows < sub:
        tm = rows                       # full extent (legal)
    else:
        tm = _BLOCK_BUDGET_BYTES // max(1, tn * itemsize)
        tm = _round_down(tm, sub)
        tm = min(tm, _round_down(rows, sub))
        # Keep >= ~4 grid steps when rows allow, so both v7x TensorCores stay busy.
        lane_steps = pl.cdiv(lanes, tn)
        if rows >= 4 * sub and pl.cdiv(rows, tm) * lane_steps < 4:
            tm = _round_down(rows // 4, sub)
    return tm, tn


def _pack_factor(rows, hw):
    """Pack k consecutive (N*C) rows into one flattened row so the lane dim is a 128-multiple."""
    if hw % 128 == 0:
        return 1
    k = 128 // math.gcd(hw, 128)
    if k > 1 and rows % k == 0:
        return k
    return 1


# ---------------------------------------------------------------------------
# Forward
# ---------------------------------------------------------------------------
def fade_to_black_forward(x, p_mat, *, force_pallas=False):
    """x: (N, C, H, W), p_mat: (1, H, W). Returns x * p_mat (broadcast over N, C)."""
    N, C, H, W = x.shape
    rows = N * C
    hw = H * W
    itemsize = x.dtype.itemsize

    mask = p_mat.astype(x.dtype)

    # Small-input fast path: pallas_call fixed cost dominates below ~1 MiB; let XLA fuse it.
    if not force_pallas and rows * hw * itemsize < (1 << 20):
        return x * mask[None]

    # Lane-dense repack so the last dim is a multiple of 128 whenever possible.
    k = _pack_factor(rows, hw)
    rows_p = rows // k
    lanes = k * hw

    x_flat = x.reshape(rows_p, lanes)
    p_flat = mask.reshape(1, hw)
    if k > 1:
        p_flat = jnp.tile(p_flat, (1, k))   # each packed row is k original rows, same mask each

    tm, tn = _choose_blocks(rows_p, lanes, itemsize)
    grid = (pl.cdiv(rows_p, tm), pl.cdiv(lanes, tn))

    cost = pl.CostEstimate(
        flops=rows_p * lanes,
        bytes_accessed=2 * rows_p * lanes * itemsize + lanes * itemsize,
        transcendentals=0,
    )

    out_flat = pl.pallas_call(
        _fade_kernel,
        out_shape=jax.ShapeDtypeStruct((rows_p, lanes), x.dtype),
        grid=grid,
        in_specs=[
            pl.BlockSpec((tm, tn), lambda i, j: (i, j)),   # stream x blocks
            pl.BlockSpec((1, tn), lambda i, j: (0, j)),    # mask: row index constant -> resident
        ],
        out_specs=pl.BlockSpec((tm, tn), lambda i, j: (i, j)),
        compiler_params=pltpu.CompilerParams(
            dimension_semantics=("parallel", "parallel"),  # pure elementwise; megacore-shardable
        ),
        cost_estimate=cost,
    )(x_flat, p_flat)

    return out_flat.reshape(N, C, H, W)


# ---------------------------------------------------------------------------
# Demo / self-test
# ---------------------------------------------------------------------------
if __name__ == "__main__":
    # Small shapes consistent with the module: image 16x16, kernel_size (3, 3)
    N, C, H, W = 2, 4, 16, 16
    im_size = [H, W]
    kernel_size = (3, 3)

    key = jax.random.PRNGKey(0)
    x = jax.random.normal(key, (N, C, H, W), dtype=jnp.float32)

    p_mat = fadetoblack_mask(im_size, kernel_size)

    # Force the Pallas path so the kernel itself is exercised at this small demo shape.
    out = fade_to_black_forward(x, p_mat, force_pallas=True)
    out = jax.block_until_ready(out)

    # Also exercise the auto-dispatch (small-input fast path) once.
    out_fast = jax.block_until_ready(fade_to_black_forward(x, p_mat))

    # Reference check (plain JAX broadcast multiply)
    ref = x * p_mat[None]  # (N,C,H,W) * (1,1,H,W)
    assert out.shape == (N, C, H, W)
    np.testing.assert_allclose(np.asarray(out), np.asarray(ref), rtol=1e-6, atol=1e-6)
    np.testing.assert_allclose(np.asarray(out_fast), np.asarray(ref), rtol=1e-6, atol=1e-6)

    print("KERNEL_OK")
</pallas_src>

<mosaic_0001>
module attributes {stable_mosaic.version = 11 : i64} {
  func.func @_fade_kernel(%arg0: i32, %arg1: i32, %arg2: memref<8x256xf32, #tpu.memory_space<vmem>>, %arg3: memref<1x256xf32, #tpu.memory_space<vmem>>, %arg4: memref<8x256xf32, #tpu.memory_space<vmem>>) attributes {dimension_semantics = [#tpu.dimension_semantics<parallel>, #tpu.dimension_semantics<parallel>], iteration_bounds = array<i64: 1, 1>, scalar_prefetch = 0 : i64, scratch_operands = 0 : i64, tpu.core_type = #tpu.core_type<tc>, window_params = [{transform_indices = @transform_0, window_bounds = array<i64: 8, 256>}, {transform_indices = @transform_1, window_bounds = array<i64: 1, 256>}, {transform_indices = @transform_2, window_bounds = array<i64: 8, 256>}]} {
    %c0 = arith.constant 0 : index
    %c0_0 = arith.constant 0 : index
    %0 = vector.load %arg2[%c0, %c0_0] : memref<8x256xf32, #tpu.memory_space<vmem>>, vector<8x256xf32>
    %c0_1 = arith.constant 0 : index
    %c0_2 = arith.constant 0 : index
    %1 = vector.load %arg3[%c0_1, %c0_2] : memref<1x256xf32, #tpu.memory_space<vmem>>, vector<1x256xf32>
    %2 = vector.broadcast %1 : vector<1x256xf32> to vector<8x256xf32>
    %3 = arith.mulf %0, %2 : vector<8x256xf32>
    %c0_3 = arith.constant 0 : index
    %c0_4 = arith.constant 0 : index
    %4 = vector.load %arg4[%c0_3, %c0_4] : memref<8x256xf32, #tpu.memory_space<vmem>>, vector<8x256xf32>
    tpu.vector_store %arg4[%c0_3, %c0_4], %3 {strides = array<i32>} : memref<8x256xf32, #tpu.memory_space<vmem>>, vector<8x256xf32>,
    return
  }
  func.func @transform_0(%arg0: i32, %arg1: i32) -> (i32, i32) {
    %c0_i32 = arith.constant 0 : i32
    return %arg0, %arg1 : i32, i32
  }
  func.func @transform_1(%arg0: i32, %arg1: i32) -> (i32, i32) {
    %c0_i32 = arith.constant 0 : i32
    %c0_i32_0 = arith.constant 0 : i32
    return %c0_i32, %arg1 : i32, i32
  }
  func.func @transform_2(%arg0: i32, %arg1: i32) -> (i32, i32) {
    %c0_i32 = arith.constant 0 : i32
    return %arg0, %arg1 : i32, i32
  }
}

</mosaic_0001>

<bundles_post_ra>
// kernel: tpu_custom_call.1
= control target key start
LH: loop header
LB: loop body
LE: loop exit
PB: predicated region body
PF: predicated region fallthrough
CT: control target
= control target key end

     0   :  { %7 = vsyncpa [#allocation3], 0  ;;  %s166_s0 = inlined_call_operand.hbm [shape: f32[8,256], index: 0, kind: input, shape index: {}]   ;;  %s167_s1 = inlined_call_operand.hbm [shape: f32[1,256], index: 1, kind: input, shape index: {}]   ;;  %s168_s2 = inlined_call_operand.hbm [shape: f32[8,256], index: 2, kind: output, shape index: {}]  }
   0x1   :  { %8 = vsyncpa [#allocation6], 0 }
   0x2   :  { %9 = vsyncpa [#allocation4], 0  ;;  %s139_s9 = smov [#allocation2]   ;;  %s140_s11 = smov [#allocation5]  }
   0x3   :  { %s16_s10 = sshll.u32 %s139_s9, 4  ;;  %s26_s12 = sshll.u32 %s140_s11, 4  ;;  %s17_s10 = int_to_ptr.vmem [resolvable:$true] %s16_s10  ;;  %s27_s12 = int_to_ptr.vmem [resolvable:$true] %s26_s12 }
   0x4   :  { %s81_s13 = scalar_lea.vmem %s17_s10, 256  ;;  %p86_p1 = scmp.lt.s32.totalorder %s17_s10, %s17_s10 }
   0x5   :  { %p82_p0 = scmp.ne.s32.totalorder %s17_s10, %s81_s13  ;;  %p87_p2 = scmp.lt.s32.totalorder %s81_s13, %s81_s13 }
   0x7   :  { %p88_p3 = por %p87_p2, %p86_p1 }
   0x9   :  { %p89_p4 = pnand %p88_p3, %p82_p0 }
   0xb   :  { %92 = shalt.err (!%p89_p4)
}
   0xc   :  { %19 = dma.hbm_to_vmem [thread:$0]  %s166_s0, 256, %s17_s10, [#allocation3]  }
   0xd   :  { %s101_s16 = scalar_lea.vmem %s27_s12, 32  ;;  %p106_p6 = scmp.lt.s32.totalorder %s27_s12, %s27_s12 }
   0xe   :  { %p102_p5 = scmp.ne.s32.totalorder %s27_s12, %s101_s16  ;;  %p107_p7 = scmp.lt.s32.totalorder %s101_s16, %s101_s16 }
  0x10   :  { %p108_p8 = por %p107_p7, %p106_p6 }
  0x12   :  { %p109_p9 = pnand %p108_p8, %p102_p5 }
  0x14   :  { %112 = shalt.err (!%p109_p9)
}
  0x15   :  { %29 = dma.hbm_to_vmem [thread:$0]  %s167_s1, 32, %s27_s12, [#allocation6]  }
  0x16   :  { %133 = dma.done.wait [#allocation3], 256  }
  0x17   :  { %134 = vsyncadd [#allocation3], 4294967040 }
  0x18   :  { %135 = dma.done.wait [#allocation6], 32  }
  0x19   :  { %136 = vsyncadd [#allocation6], 4294967264  ;;  %v40_v0 = vlaneseq  ;;  %v36_v4 = vld [vmem:[#allocation2] sm:$0xff]  ;;  %v38_v5 = vld [vmem:[#allocation5] sm:$0x3]  ;;  %s141_s0 = smov [#allocation7]  }
  0x1a   :  { %v37_v6 = vld [vmem:[#allocation2 + $0x8] sm:$0xff]  ;;  %s60_s19 = sshll.u32 %s141_s0, 4  ;;  %s61_s19 = int_to_ptr.vmem [resolvable:$true] %s60_s19 }
  0x1b   :  { %v41_v1 = vshrl.u32 %v40_v0, 7  ;;  %s113_s1 = scalar_lea.vmem %s61_s19, 256  ;;  %p118_p11 = scmp.lt.s32.totalorder %s61_s19, %s61_s19 }
  0x1c   :  { %p114_p10 = scmp.ne.s32.totalorder %s61_s19, %s113_s1  ;;  %p119_p12 = scmp.lt.s32.totalorder %s113_s1, %s113_s1 }
  0x1d   :  { %v42_v2 = vsub.s32 0, %v41_v1  ;;  %v46_v3 = vsub.s32 1, %v41_v1 }
  0x1e   :  { %p120_p13 = por %p119_p12, %p118_p11 }
  0x1f   :  { %v43_v7 = vrot.slane %v38_v5, %v42_v2  ;;  %v47_v8 = vrot.slane %v38_v5, %v46_v3 }
  0x20   :  { %p121_p0 = pnand %p120_p13, %p114_p10 }
  0x21   :  { %v50_v9 = vmul.f32 %v43_v7, %v36_v4  ;;  %v51_v10 = vmul.f32 %v47_v8, %v37_v6 }
  0x23   :  { %52 = vst [vmem:[#allocation7] sm:$0xff] %v50_v9  ;;  %53 = vst [vmem:[#allocation7 + $0x8] sm:$0xff] %v51_v10 }
  0x24   :  { %124 = shalt.err (!%p121_p0)
}
  0x25   :  { %63 = dma.vmem_to_hbm [thread:$0]  %s61_s19, 256, %s168_s2, [#allocation4]  }
  0x26   :  { %137 = dma.done.wait [#allocation4], 256  }
  0x27   :  { %138 = vsyncadd [#allocation4], 4294967040 }
  0x28   :  { %67 = vsyncpa [#allocation3], 1 }
  0x29   :  { %68 = vsyncpa [#allocation6], 1 }
  0x2a   :  { %69 = vsyncpa [#allocation4], 1 }

</bundles_post_ra>
